<compile_context>
chip_gen: v6e
topology: v6e:2x2x1
jax: 0.10.0
libtpu: 0.0.40
codegen_flags: <defaults>
</compile_context>

<pallas_src>
import numpy as np
import jax
import jax.numpy as jnp
from jax.experimental import pallas as pl
from jax.experimental.pallas import tpu as pltpu


def _round_up(x, m):
    return ((x + m - 1) // m) * m


# Kernel block shapes:
#   a/b/c_out, a/b/c_gt : (3, B, TILE_F)  leading axis = x/y/z coordinate
#   va, vb, vc          : (B, TILE_F)     per-vertex valid mask
#   out                 : (B, 3, TILE_F)  middle axis = (diff1, diff2, diff3)
def _edge_length_loss_kernel(ao_ref, bo_ref, co_ref, ag_ref, bg_ref, cg_ref,
                             va_ref, vb_ref, vc_ref, out_ref):
    def edge_len(p_ref, q_ref):
        # Unrolled 3-term squared distance: plane loads on the leading
        # coordinate axis, pure VPU math + one EUP sqrt, no cross-sublane
        # (XLU) reduction.
        dx = p_ref[0] - q_ref[0]
        dy = p_ref[1] - q_ref[1]
        dz = p_ref[2] - q_ref[2]
        return jnp.sqrt(dx * dx + dy * dy + dz * dz)        # (B, TILE_F)

    d1_out = edge_len(ao_ref, bo_ref)
    d2_out = edge_len(ao_ref, co_ref)
    d3_out = edge_len(bo_ref, co_ref)
    d1_gt = edge_len(ag_ref, bg_ref)
    d2_gt = edge_len(ag_ref, cg_ref)
    d3_gt = edge_len(bg_ref, cg_ref)

    va = va_ref[...]                                        # (B, TILE_F)
    vb = vb_ref[...]
    vc = vc_ref[...]

    # Emit directly in the final (batch-major, diff-minor) order so the
    # wrapper never transposes.  Lanes (TILE_F) are fully dense per store.
    out_ref[:, 0, :] = jnp.abs(d1_out - d1_gt) * (va * vb)
    out_ref[:, 1, :] = jnp.abs(d2_out - d2_gt) * (va * vc)
    out_ref[:, 2, :] = jnp.abs(d3_out - d3_gt) * (vb * vc)


def _reference(coord_out, coord_gt, valid, face):
    """Pure-JAX reference mirroring the PyTorch forward exactly."""
    face = jnp.asarray(face, jnp.int32)
    f0, f1, f2 = face[:, 0], face[:, 1], face[:, 2]

    def d(c, a, b):
        return jnp.sqrt(jnp.sum((c[:, a, :] - c[:, b, :]) ** 2, 2, keepdims=True))

    d1_out = d(coord_out, f0, f1)
    d2_out = d(coord_out, f0, f2)
    d3_out = d(coord_out, f1, f2)
    d1_gt = d(coord_gt, f0, f1)
    d2_gt = d(coord_gt, f0, f2)
    d3_gt = d(coord_gt, f1, f2)
    m1 = valid[:, f0, :] * valid[:, f1, :]
    m2 = valid[:, f0, :] * valid[:, f2, :]
    m3 = valid[:, f1, :] * valid[:, f2, :]
    diff1 = jnp.abs(d1_out - d1_gt) * m1
    diff2 = jnp.abs(d2_out - d2_gt) * m2
    diff3 = jnp.abs(d3_out - d3_gt) * m3
    return jnp.concatenate((diff1, diff2, diff3), axis=1)


def edge_length_loss(coord_out, coord_gt, valid, face, *,
                     tile_f=None, use_pallas=None):
    """face: numpy int array (F, 3). Returns (B, 3*F, 1) float32 loss."""
    B, V, C = coord_out.shape
    assert C == 3
    face = np.asarray(face)
    Fn = int(face.shape[0])

    # Small-mesh fast path: kernel launch + 128-lane padding overhead exceeds
    # the useful work; let XLA fuse the whole thing instead.
    if use_pallas is None:
        use_pallas = Fn >= 1024
    if not use_pallas:
        return _reference(coord_out, coord_gt, valid, face)

    # ---- tiling ------------------------------------------------------------
    f128 = _round_up(Fn, 128)
    auto_tile = tile_f is None
    if auto_tile:
        # ~10 MiB double-buffered working set (sublane padding accounted for):
        # 6 coord blocks (3 planes, B->8 rows), 3 valid blocks, 1 output block.
        r_b = _round_up(B, 8)
        bytes_per_lane_col = 2 * 4 * (6 * 3 * r_b + 3 * r_b + 8 * B)
        budget = 10 * 1024 * 1024
        tile_f = max(128, min(8192, (budget // bytes_per_lane_col) // 128 * 128))
    tile_f = _round_up(min(int(tile_f), f128), 128)
    if auto_tile and f128 > 128 and f128 // tile_f < 2:
        # Keep >= 2 grid steps so both v7x TensorCores get a share.
        tile_f = _round_up((f128 + 1) // 2, 128)
    f_pad = _round_up(Fn, tile_f)
    pad = f_pad - Fn

    # ---- gathers (plain JAX glue; data-dependent gather stays outside) ------
    # One transpose per coord tensor (over V, cheap vs. F-sized slabs), then
    # last-axis gathers.  Face-axis padding is done on the tiny index vectors:
    # padded lanes pick vertex 0 (finite values) and are sliced off below.
    idx = face.astype(np.int32)
    i0 = jnp.asarray(np.pad(idx[:, 0], (0, pad)))
    i1 = jnp.asarray(np.pad(idx[:, 1], (0, pad)))
    i2 = jnp.asarray(np.pad(idx[:, 2], (0, pad)))

    co3 = jnp.moveaxis(coord_out.astype(jnp.float32), -1, 0)   # (3, B, V)
    cg3 = jnp.moveaxis(coord_gt.astype(jnp.float32), -1, 0)    # (3, B, V)
    v2 = valid[..., 0].astype(jnp.float32)                     # (B, V)

    a_out = co3[:, :, i0]                                       # (3, B, f_pad)
    b_out = co3[:, :, i1]
    c_out = co3[:, :, i2]
    a_gt = cg3[:, :, i0]
    b_gt = cg3[:, :, i1]
    c_gt = cg3[:, :, i2]
    va = v2[:, i0]                                              # (B, f_pad)
    vb = v2[:, i1]
    vc = v2[:, i2]

    grid = (f_pad // tile_f,)
    cost = pl.CostEstimate(
        flops=60 * B * f_pad,
        transcendentals=6 * B * f_pad,
        bytes_accessed=(18 + 3 + 3) * B * f_pad * 4,
    )

    coord_spec = pl.BlockSpec((3, B, tile_f), lambda i: (0, 0, i))
    valid_spec = pl.BlockSpec((B, tile_f), lambda i: (0, i))

    out_pad = pl.pallas_call(
        _edge_length_loss_kernel,
        out_shape=jax.ShapeDtypeStruct((B, 3, f_pad), jnp.float32),
        grid=grid,
        in_specs=[coord_spec] * 6 + [valid_spec] * 3,
        out_specs=pl.BlockSpec((B, 3, tile_f), lambda i: (0, 0, i)),
        compiler_params=pltpu.CompilerParams(
            dimension_semantics=("parallel",),
            vmem_limit_bytes=32 * 1024 * 1024),
        cost_estimate=cost,
    )(a_out, b_out, c_out, a_gt, b_gt, c_gt, va, vb, vc)

    # (B, 3, F_pad) -> drop padded lanes -> (B, 3*F, 1).  Row order per batch is
    # [diff1(F), diff2(F), diff3(F)], matching torch.cat((diff1,diff2,diff3), 1).
    return out_pad[:, :, :Fn].reshape(B, 3 * Fn, 1)


if __name__ == "__main__":
    B, V = 2, 16
    key = jax.random.PRNGKey(0)
    k1, k2, k3 = jax.random.split(key, 3)
    coord_out = jax.random.normal(k1, (B, V, 3), dtype=jnp.float32)
    coord_gt = jax.random.normal(k2, (B, V, 3), dtype=jnp.float32)
    valid = (jax.random.uniform(k3, (B, V, 1)) > 0.3).astype(jnp.float32)

    def make_face(Fn):
        base = np.arange(Fn, dtype=np.int32)
        return np.stack([base % V, (base + 1) % V, (base + 5) % V], axis=1)

    # Pallas path: auto tile (>=2 grid steps) and an explicit small tile.
    for Fn, tf in ((300, None), (300, 128), (384, None)):
        face = make_face(Fn)
        loss = edge_length_loss(coord_out, coord_gt, valid, face,
                                tile_f=tf, use_pallas=True)
        loss = jax.block_until_ready(loss)
        ref = jax.block_until_ready(_reference(coord_out, coord_gt, valid, face))
        assert loss.shape == (B, 3 * Fn, 1)
        np.testing.assert_allclose(np.asarray(loss), np.asarray(ref),
                                   rtol=1e-5, atol=1e-5)

    # Small-F fast path (dispatches to the fused pure-JAX reference).
    face = make_face(12)
    loss = jax.block_until_ready(edge_length_loss(coord_out, coord_gt, valid, face))
    ref = jax.block_until_ready(_reference(coord_out, coord_gt, valid, face))
    np.testing.assert_allclose(np.asarray(loss), np.asarray(ref),
                               rtol=1e-5, atol=1e-5)

    print("KERNEL_OK")
</pallas_src>

<mosaic_0001>
module attributes {stable_mosaic.version = 11 : i64} {
  func.func @_edge_length_loss_kernel(%arg0: i32, %arg1: memref<3x2x256xf32, #tpu.memory_space<vmem>>, %arg2: memref<3x2x256xf32, #tpu.memory_space<vmem>>, %arg3: memref<3x2x256xf32, #tpu.memory_space<vmem>>, %arg4: memref<3x2x256xf32, #tpu.memory_space<vmem>>, %arg5: memref<3x2x256xf32, #tpu.memory_space<vmem>>, %arg6: memref<3x2x256xf32, #tpu.memory_space<vmem>>, %arg7: memref<2x256xf32, #tpu.memory_space<vmem>>, %arg8: memref<2x256xf32, #tpu.memory_space<vmem>>, %arg9: memref<2x256xf32, #tpu.memory_space<vmem>>, %arg10: memref<2x3x256xf32, #tpu.memory_space<vmem>>) attributes {dimension_semantics = [#tpu.dimension_semantics<parallel>], iteration_bounds = array<i64: 2>, scalar_prefetch = 0 : i64, scratch_operands = 0 : i64, tpu.core_type = #tpu.core_type<tc>, window_params = [{transform_indices = @transform_0, window_bounds = array<i64: 3, 2, 256>}, {transform_indices = @transform_1, window_bounds = array<i64: 3, 2, 256>}, {transform_indices = @transform_2, window_bounds = array<i64: 3, 2, 256>}, {transform_indices = @transform_3, window_bounds = array<i64: 3, 2, 256>}, {transform_indices = @transform_4, window_bounds = array<i64: 3, 2, 256>}, {transform_indices = @transform_5, window_bounds = array<i64: 3, 2, 256>}, {transform_indices = @transform_6, window_bounds = array<i64: 2, 256>}, {transform_indices = @transform_7, window_bounds = array<i64: 2, 256>}, {transform_indices = @transform_8, window_bounds = array<i64: 2, 256>}, {transform_indices = @transform_9, window_bounds = array<i64: 2, 3, 256>}]} {
    %c0 = arith.constant 0 : index
    %c0_0 = arith.constant 0 : index
    %c0_1 = arith.constant 0 : index
    %0 = vector.load %arg1[%c0, %c0_0, %c0_1] : memref<3x2x256xf32, #tpu.memory_space<vmem>>, vector<1x2x256xf32>
    %1 = vector.shape_cast %0 : vector<1x2x256xf32> to vector<2x256xf32>
    %c0_2 = arith.constant 0 : index
    %c0_3 = arith.constant 0 : index
    %c0_4 = arith.constant 0 : index
    %2 = vector.load %arg2[%c0_2, %c0_3, %c0_4] : memref<3x2x256xf32, #tpu.memory_space<vmem>>, vector<1x2x256xf32>
    %3 = vector.shape_cast %2 : vector<1x2x256xf32> to vector<2x256xf32>
    %4 = arith.subf %1, %3 : vector<2x256xf32>
    %c1 = arith.constant 1 : index
    %c0_5 = arith.constant 0 : index
    %c0_6 = arith.constant 0 : index
    %5 = vector.load %arg1[%c1, %c0_5, %c0_6] : memref<3x2x256xf32, #tpu.memory_space<vmem>>, vector<1x2x256xf32>
    %6 = vector.shape_cast %5 : vector<1x2x256xf32> to vector<2x256xf32>
    %c1_7 = arith.constant 1 : index
    %c0_8 = arith.constant 0 : index
    %c0_9 = arith.constant 0 : index
    %7 = vector.load %arg2[%c1_7, %c0_8, %c0_9] : memref<3x2x256xf32, #tpu.memory_space<vmem>>, vector<1x2x256xf32>
    %8 = vector.shape_cast %7 : vector<1x2x256xf32> to vector<2x256xf32>
    %9 = arith.subf %6, %8 : vector<2x256xf32>
    %c2 = arith.constant 2 : index
    %c0_10 = arith.constant 0 : index
    %c0_11 = arith.constant 0 : index
    %10 = vector.load %arg1[%c2, %c0_10, %c0_11] : memref<3x2x256xf32, #tpu.memory_space<vmem>>, vector<1x2x256xf32>
    %11 = vector.shape_cast %10 : vector<1x2x256xf32> to vector<2x256xf32>
    %c2_12 = arith.constant 2 : index
    %c0_13 = arith.constant 0 : index
    %c0_14 = arith.constant 0 : index
    %12 = vector.load %arg2[%c2_12, %c0_13, %c0_14] : memref<3x2x256xf32, #tpu.memory_space<vmem>>, vector<1x2x256xf32>
    %13 = vector.shape_cast %12 : vector<1x2x256xf32> to vector<2x256xf32>
    %14 = arith.subf %11, %13 : vector<2x256xf32>
    %15 = arith.mulf %4, %4 : vector<2x256xf32>
    %16 = arith.mulf %9, %9 : vector<2x256xf32>
    %17 = arith.addf %15, %16 : vector<2x256xf32>
    %18 = arith.mulf %14, %14 : vector<2x256xf32>
    %19 = arith.addf %17, %18 : vector<2x256xf32>
    %20 = math.sqrt %19 : vector<2x256xf32>
    %c0_15 = arith.constant 0 : index
    %c0_16 = arith.constant 0 : index
    %c0_17 = arith.constant 0 : index
    %21 = vector.load %arg1[%c0_15, %c0_16, %c0_17] : memref<3x2x256xf32, #tpu.memory_space<vmem>>, vector<1x2x256xf32>
    %22 = vector.shape_cast %21 : vector<1x2x256xf32> to vector<2x256xf32>
    %c0_18 = arith.constant 0 : index
    %c0_19 = arith.constant 0 : index
    %c0_20 = arith.constant 0 : index
    %23 = vector.load %arg3[%c0_18, %c0_19, %c0_20] : memref<3x2x256xf32, #tpu.memory_space<vmem>>, vector<1x2x256xf32>
    %24 = vector.shape_cast %23 : vector<1x2x256xf32> to vector<2x256xf32>
    %25 = arith.subf %22, %24 : vector<2x256xf32>
    %c1_21 = arith.constant 1 : index
    %c0_22 = arith.constant 0 : index
    %c0_23 = arith.constant 0 : index
    %26 = vector.load %arg1[%c1_21, %c0_22, %c0_23] : memref<3x2x256xf32, #tpu.memory_space<vmem>>, vector<1x2x256xf32>
    %27 = vector.shape_cast %26 : vector<1x2x256xf32> to vector<2x256xf32>
    %c1_24 = arith.constant 1 : index
    %c0_25 = arith.constant 0 : index
    %c0_26 = arith.constant 0 : index
    %28 = vector.load %arg3[%c1_24, %c0_25, %c0_26] : memref<3x2x256xf32, #tpu.memory_space<vmem>>, vector<1x2x256xf32>
    %29 = vector.shape_cast %28 : vector<1x2x256xf32> to vector<2x256xf32>
    %30 = arith.subf %27, %29 : vector<2x256xf32>
    %c2_27 = arith.constant 2 : index
    %c0_28 = arith.constant 0 : index
    %c0_29 = arith.constant 0 : index
    %31 = vector.load %arg1[%c2_27, %c0_28, %c0_29] : memref<3x2x256xf32, #tpu.memory_space<vmem>>, vector<1x2x256xf32>
    %32 = vector.shape_cast %31 : vector<1x2x256xf32> to vector<2x256xf32>
    %c2_30 = arith.constant 2 : index
    %c0_31 = arith.constant 0 : index
    %c0_32 = arith.constant 0 : index
    %33 = vector.load %arg3[%c2_30, %c0_31, %c0_32] : memref<3x2x256xf32, #tpu.memory_space<vmem>>, vector<1x2x256xf32>
    %34 = vector.shape_cast %33 : vector<1x2x256xf32> to vector<2x256xf32>
    %35 = arith.subf %32, %34 : vector<2x256xf32>
    %36 = arith.mulf %25, %25 : vector<2x256xf32>
    %37 = arith.mulf %30, %30 : vector<2x256xf32>
    %38 = arith.addf %36, %37 : vector<2x256xf32>
    %39 = arith.mulf %35, %35 : vector<2x256xf32>
    %40 = arith.addf %38, %39 : vector<2x256xf32>
    %41 = math.sqrt %40 : vector<2x256xf32>
    %c0_33 = arith.constant 0 : index
    %c0_34 = arith.constant 0 : index
    %c0_35 = arith.constant 0 : index
    %42 = vector.load %arg2[%c0_33, %c0_34, %c0_35] : memref<3x2x256xf32, #tpu.memory_space<vmem>>, vector<1x2x256xf32>
    %43 = vector.shape_cast %42 : vector<1x2x256xf32> to vector<2x256xf32>
    %c0_36 = arith.constant 0 : index
    %c0_37 = arith.constant 0 : index
    %c0_38 = arith.constant 0 : index
    %44 = vector.load %arg3[%c0_36, %c0_37, %c0_38] : memref<3x2x256xf32, #tpu.memory_space<vmem>>, vector<1x2x256xf32>
    %45 = vector.shape_cast %44 : vector<1x2x256xf32> to vector<2x256xf32>
    %46 = arith.subf %43, %45 : vector<2x256xf32>
    %c1_39 = arith.constant 1 : index
    %c0_40 = arith.constant 0 : index
    %c0_41 = arith.constant 0 : index
    %47 = vector.load %arg2[%c1_39, %c0_40, %c0_41] : memref<3x2x256xf32, #tpu.memory_space<vmem>>, vector<1x2x256xf32>
    %48 = vector.shape_cast %47 : vector<1x2x256xf32> to vector<2x256xf32>
    %c1_42 = arith.constant 1 : index
    %c0_43 = arith.constant 0 : index
    %c0_44 = arith.constant 0 : index
    %49 = vector.load %arg3[%c1_42, %c0_43, %c0_44] : memref<3x2x256xf32, #tpu.memory_space<vmem>>, vector<1x2x256xf32>
    %50 = vector.shape_cast %49 : vector<1x2x256xf32> to vector<2x256xf32>
    %51 = arith.subf %48, %50 : vector<2x256xf32>
    %c2_45 = arith.constant 2 : index
    %c0_46 = arith.constant 0 : index
    %c0_47 = arith.constant 0 : index
    %52 = vector.load %arg2[%c2_45, %c0_46, %c0_47] : memref<3x2x256xf32, #tpu.memory_space<vmem>>, vector<1x2x256xf32>
    %53 = vector.shape_cast %52 : vector<1x2x256xf32> to vector<2x256xf32>
    %c2_48 = arith.constant 2 : index
    %c0_49 = arith.constant 0 : index
    %c0_50 = arith.constant 0 : index
    %54 = vector.load %arg3[%c2_48, %c0_49, %c0_50] : memref<3x2x256xf32, #tpu.memory_space<vmem>>, vector<1x2x256xf32>
    %55 = vector.shape_cast %54 : vector<1x2x256xf32> to vector<2x256xf32>
    %56 = arith.subf %53, %55 : vector<2x256xf32>
    %57 = arith.mulf %46, %46 : vector<2x256xf32>
    %58 = arith.mulf %51, %51 : vector<2x256xf32>
    %59 = arith.addf %57, %58 : vector<2x256xf32>
    %60 = arith.mulf %56, %56 : vector<2x256xf32>
    %61 = arith.addf %59, %60 : vector<2x256xf32>
    %62 = math.sqrt %61 : vector<2x256xf32>
    %c0_51 = arith.constant 0 : index
    %c0_52 = arith.constant 0 : index
    %c0_53 = arith.constant 0 : index
    %63 = vector.load %arg4[%c0_51, %c0_52, %c0_53] : memref<3x2x256xf32, #tpu.memory_space<vmem>>, vector<1x2x256xf32>
    %64 = vector.shape_cast %63 : vector<1x2x256xf32> to vector<2x256xf32>
    %c0_54 = arith.constant 0 : index
    %c0_55 = arith.constant 0 : index
    %c0_56 = arith.constant 0 : index
    %65 = vector.load %arg5[%c0_54, %c0_55, %c0_56] : memref<3x2x256xf32, #tpu.memory_space<vmem>>, vector<1x2x256xf32>
    %66 = vector.shape_cast %65 : vector<1x2x256xf32> to vector<2x256xf32>
    %67 = arith.subf %64, %66 : vector<2x256xf32>
    %c1_57 = arith.constant 1 : index
    %c0_58 = arith.constant 0 : index
    %c0_59 = arith.constant 0 : index
    %68 = vector.load %arg4[%c1_57, %c0_58, %c0_59] : memref<3x2x256xf32, #tpu.memory_space<vmem>>, vector<1x2x256xf32>
    %69 = vector.shape_cast %68 : vector<1x2x256xf32> to vector<2x256xf32>
    %c1_60 = arith.constant 1 : index
    %c0_61 = arith.constant 0 : index
    %c0_62 = arith.constant 0 : index
    %70 = vector.load %arg5[%c1_60, %c0_61, %c0_62] : memref<3x2x256xf32, #tpu.memory_space<vmem>>, vector<1x2x256xf32>
    %71 = vector.shape_cast %70 : vector<1x2x256xf32> to vector<2x256xf32>
    %72 = arith.subf %69, %71 : vector<2x256xf32>
    %c2_63 = arith.constant 2 : index
    %c0_64 = arith.constant 0 : index
    %c0_65 = arith.constant 0 : index
    %73 = vector.load %arg4[%c2_63, %c0_64, %c0_65] : memref<3x2x256xf32, #tpu.memory_space<vmem>>, vector<1x2x256xf32>
    %74 = vector.shape_cast %73 : vector<1x2x256xf32> to vector<2x256xf32>
    %c2_66 = arith.constant 2 : index
    %c0_67 = arith.constant 0 : index
    %c0_68 = arith.constant 0 : index
    %75 = vector.load %arg5[%c2_66, %c0_67, %c0_68] : memref<3x2x256xf32, #tpu.memory_space<vmem>>, vector<1x2x256xf32>
    %76 = vector.shape_cast %75 : vector<1x2x256xf32> to vector<2x256xf32>
    %77 = arith.subf %74, %76 : vector<2x256xf32>
    %78 = arith.mulf %67, %67 : vector<2x256xf32>
    %79 = arith.mulf %72, %72 : vector<2x256xf32>
    %80 = arith.addf %78, %79 : vector<2x256xf32>
    %81 = arith.mulf %77, %77 : vector<2x256xf32>
    %82 = arith.addf %80, %81 : vector<2x256xf32>
    %83 = math.sqrt %82 : vector<2x256xf32>
    %c0_69 = arith.constant 0 : index
    %c0_70 = arith.constant 0 : index
    %c0_71 = arith.constant 0 : index
    %84 = vector.load %arg4[%c0_69, %c0_70, %c0_71] : memref<3x2x256xf32, #tpu.memory_space<vmem>>, vector<1x2x256xf32>
    %85 = vector.shape_cast %84 : vector<1x2x256xf32> to vector<2x256xf32>
    %c0_72 = arith.constant 0 : index
    %c0_73 = arith.constant 0 : index
    %c0_74 = arith.constant 0 : index
    %86 = vector.load %arg6[%c0_72, %c0_73, %c0_74] : memref<3x2x256xf32, #tpu.memory_space<vmem>>, vector<1x2x256xf32>
    %87 = vector.shape_cast %86 : vector<1x2x256xf32> to vector<2x256xf32>
    %88 = arith.subf %85, %87 : vector<2x256xf32>
    %c1_75 = arith.constant 1 : index
    %c0_76 = arith.constant 0 : index
    %c0_77 = arith.constant 0 : index
    %89 = vector.load %arg4[%c1_75, %c0_76, %c0_77] : memref<3x2x256xf32, #tpu.memory_space<vmem>>, vector<1x2x256xf32>
    %90 = vector.shape_cast %89 : vector<1x2x256xf32> to vector<2x256xf32>
    %c1_78 = arith.constant 1 : index
    %c0_79 = arith.constant 0 : index
    %c0_80 = arith.constant 0 : index
    %91 = vector.load %arg6[%c1_78, %c0_79, %c0_80] : memref<3x2x256xf32, #tpu.memory_space<vmem>>, vector<1x2x256xf32>
    %92 = vector.shape_cast %91 : vector<1x2x256xf32> to vector<2x256xf32>
    %93 = arith.subf %90, %92 : vector<2x256xf32>
    %c2_81 = arith.constant 2 : index
    %c0_82 = arith.constant 0 : index
    %c0_83 = arith.constant 0 : index
    %94 = vector.load %arg4[%c2_81, %c0_82, %c0_83] : memref<3x2x256xf32, #tpu.memory_space<vmem>>, vector<1x2x256xf32>
    %95 = vector.shape_cast %94 : vector<1x2x256xf32> to vector<2x256xf32>
    %c2_84 = arith.constant 2 : index
    %c0_85 = arith.constant 0 : index
    %c0_86 = arith.constant 0 : index
    %96 = vector.load %arg6[%c2_84, %c0_85, %c0_86] : memref<3x2x256xf32, #tpu.memory_space<vmem>>, vector<1x2x256xf32>
    %97 = vector.shape_cast %96 : vector<1x2x256xf32> to vector<2x256xf32>
    %98 = arith.subf %95, %97 : vector<2x256xf32>
    %99 = arith.mulf %88, %88 : vector<2x256xf32>
    %100 = arith.mulf %93, %93 : vector<2x256xf32>
    %101 = arith.addf %99, %100 : vector<2x256xf32>
    %102 = arith.mulf %98, %98 : vector<2x256xf32>
    %103 = arith.addf %101, %102 : vector<2x256xf32>
    %104 = math.sqrt %103 : vector<2x256xf32>
    %c0_87 = arith.constant 0 : index
    %c0_88 = arith.constant 0 : index
    %c0_89 = arith.constant 0 : index
    %105 = vector.load %arg5[%c0_87, %c0_88, %c0_89] : memref<3x2x256xf32, #tpu.memory_space<vmem>>, vector<1x2x256xf32>
    %106 = vector.shape_cast %105 : vector<1x2x256xf32> to vector<2x256xf32>
    %c0_90 = arith.constant 0 : index
    %c0_91 = arith.constant 0 : index
    %c0_92 = arith.constant 0 : index
    %107 = vector.load %arg6[%c0_90, %c0_91, %c0_92] : memref<3x2x256xf32, #tpu.memory_space<vmem>>, vector<1x2x256xf32>
    %108 = vector.shape_cast %107 : vector<1x2x256xf32> to vector<2x256xf32>
    %109 = arith.subf %106, %108 : vector<2x256xf32>
    %c1_93 = arith.constant 1 : index
    %c0_94 = arith.constant 0 : index
    %c0_95 = arith.constant 0 : index
    %110 = vector.load %arg5[%c1_93, %c0_94, %c0_95] : memref<3x2x256xf32, #tpu.memory_space<vmem>>, vector<1x2x256xf32>
    %111 = vector.shape_cast %110 : vector<1x2x256xf32> to vector<2x256xf32>
    %c1_96 = arith.constant 1 : index
    %c0_97 = arith.constant 0 : index
    %c0_98 = arith.constant 0 : index
    %112 = vector.load %arg6[%c1_96, %c0_97, %c0_98] : memref<3x2x256xf32, #tpu.memory_space<vmem>>, vector<1x2x256xf32>
    %113 = vector.shape_cast %112 : vector<1x2x256xf32> to vector<2x256xf32>
    %114 = arith.subf %111, %113 : vector<2x256xf32>
    %c2_99 = arith.constant 2 : index
    %c0_100 = arith.constant 0 : index
    %c0_101 = arith.constant 0 : index
    %115 = vector.load %arg5[%c2_99, %c0_100, %c0_101] : memref<3x2x256xf32, #tpu.memory_space<vmem>>, vector<1x2x256xf32>
    %116 = vector.shape_cast %115 : vector<1x2x256xf32> to vector<2x256xf32>
    %c2_102 = arith.constant 2 : index
    %c0_103 = arith.constant 0 : index
    %c0_104 = arith.constant 0 : index
    %117 = vector.load %arg6[%c2_102, %c0_103, %c0_104] : memref<3x2x256xf32, #tpu.memory_space<vmem>>, vector<1x2x256xf32>
    %118 = vector.shape_cast %117 : vector<1x2x256xf32> to vector<2x256xf32>
    %119 = arith.subf %116, %118 : vector<2x256xf32>
    %120 = arith.mulf %109, %109 : vector<2x256xf32>
    %121 = arith.mulf %114, %114 : vector<2x256xf32>
    %122 = arith.addf %120, %121 : vector<2x256xf32>
    %123 = arith.mulf %119, %119 : vector<2x256xf32>
    %124 = arith.addf %122, %123 : vector<2x256xf32>
    %125 = math.sqrt %124 : vector<2x256xf32>
    %c0_105 = arith.constant 0 : index
    %c0_106 = arith.constant 0 : index
    %126 = vector.load %arg7[%c0_105, %c0_106] : memref<2x256xf32, #tpu.memory_space<vmem>>, vector<2x256xf32>
    %c0_107 = arith.constant 0 : index
    %c0_108 = arith.constant 0 : index
    %127 = vector.load %arg8[%c0_107, %c0_108] : memref<2x256xf32, #tpu.memory_space<vmem>>, vector<2x256xf32>
    %c0_109 = arith.constant 0 : index
    %c0_110 = arith.constant 0 : index
    %128 = vector.load %arg9[%c0_109, %c0_110] : memref<2x256xf32, #tpu.memory_space<vmem>>, vector<2x256xf32>
    %129 = arith.subf %20, %83 : vector<2x256xf32>
    %130 = math.absf %129 : vector<2x256xf32>
    %131 = arith.mulf %126, %127 : vector<2x256xf32>
    %132 = arith.mulf %130, %131 : vector<2x256xf32>
    %c0_111 = arith.constant 0 : index
    %c0_112 = arith.constant 0 : index
    %c0_113 = arith.constant 0 : index
    %133 = vector.load %arg10[%c0_111, %c0_112, %c0_113] : memref<2x3x256xf32, #tpu.memory_space<vmem>>, vector<2x1x256xf32>
    %134 = vector.shape_cast %133 : vector<2x1x256xf32> to vector<2x256xf32>
    %135 = vector.shape_cast %132 : vector<2x256xf32> to vector<2x1x256xf32>
    tpu.vector_store %arg10[%c0_111, %c0_112, %c0_113], %135 {strides = array<i32>} : memref<2x3x256xf32, #tpu.memory_space<vmem>>, vector<2x1x256xf32>,
    %136 = arith.subf %41, %104 : vector<2x256xf32>
    %137 = math.absf %136 : vector<2x256xf32>
    %138 = arith.mulf %126, %128 : vector<2x256xf32>
    %139 = arith.mulf %137, %138 : vector<2x256xf32>
    %c0_114 = arith.constant 0 : index
    %c1_115 = arith.constant 1 : index
    %c0_116 = arith.constant 0 : index
    %140 = vector.load %arg10[%c0_114, %c1_115, %c0_116] : memref<2x3x256xf32, #tpu.memory_space<vmem>>, vector<2x1x256xf32>
    %141 = vector.shape_cast %140 : vector<2x1x256xf32> to vector<2x256xf32>
    %142 = vector.shape_cast %139 : vector<2x256xf32> to vector<2x1x256xf32>
    tpu.vector_store %arg10[%c0_114, %c1_115, %c0_116], %142 {strides = array<i32>} : memref<2x3x256xf32, #tpu.memory_space<vmem>>, vector<2x1x256xf32>,
    %143 = arith.subf %62, %125 : vector<2x256xf32>
    %144 = math.absf %143 : vector<2x256xf32>
    %145 = arith.mulf %127, %128 : vector<2x256xf32>
    %146 = arith.mulf %144, %145 : vector<2x256xf32>
    %c0_117 = arith.constant 0 : index
    %c2_118 = arith.constant 2 : index
    %c0_119 = arith.constant 0 : index
    %147 = vector.load %arg10[%c0_117, %c2_118, %c0_119] : memref<2x3x256xf32, #tpu.memory_space<vmem>>, vector<2x1x256xf32>
    %148 = vector.shape_cast %147 : vector<2x1x256xf32> to vector<2x256xf32>
    %149 = vector.shape_cast %146 : vector<2x256xf32> to vector<2x1x256xf32>
    tpu.vector_store %arg10[%c0_117, %c2_118, %c0_119], %149 {strides = array<i32>} : memref<2x3x256xf32, #tpu.memory_space<vmem>>, vector<2x1x256xf32>,
    return
  }
  func.func @transform_0(%arg0: i32) -> (i32, i32, i32) {
    %c0_i32 = arith.constant 0 : i32
    %c0_i32_0 = arith.constant 0 : i32
    %c0_i32_1 = arith.constant 0 : i32
    return %c0_i32, %c0_i32_0, %arg0 : i32, i32, i32
  }
  func.func @transform_1(%arg0: i32) -> (i32, i32, i32) {
    %c0_i32 = arith.constant 0 : i32
    %c0_i32_0 = arith.constant 0 : i32
    %c0_i32_1 = arith.constant 0 : i32
    return %c0_i32, %c0_i32_0, %arg0 : i32, i32, i32
  }
  func.func @transform_2(%arg0: i32) -> (i32, i32, i32) {
    %c0_i32 = arith.constant 0 : i32
    %c0_i32_0 = arith.constant 0 : i32
    %c0_i32_1 = arith.constant 0 : i32
    return %c0_i32, %c0_i32_0, %arg0 : i32, i32, i32
  }
  func.func @transform_3(%arg0: i32) -> (i32, i32, i32) {
    %c0_i32 = arith.constant 0 : i32
    %c0_i32_0 = arith.constant 0 : i32
    %c0_i32_1 = arith.constant 0 : i32
    return %c0_i32, %c0_i32_0, %arg0 : i32, i32, i32
  }
  func.func @transform_4(%arg0: i32) -> (i32, i32, i32) {
    %c0_i32 = arith.constant 0 : i32
    %c0_i32_0 = arith.constant 0 : i32
    %c0_i32_1 = arith.constant 0 : i32
    return %c0_i32, %c0_i32_0, %arg0 : i32, i32, i32
  }
  func.func @transform_5(%arg0: i32) -> (i32, i32, i32) {
    %c0_i32 = arith.constant 0 : i32
    %c0_i32_0 = arith.constant 0 : i32
    %c0_i32_1 = arith.constant 0 : i32
    return %c0_i32, %c0_i32_0, %arg0 : i32, i32, i32
  }
  func.func @transform_6(%arg0: i32) -> (i32, i32) {
    %c0_i32 = arith.constant 0 : i32
    %c0_i32_0 = arith.constant 0 : i32
    return %c0_i32, %arg0 : i32, i32
  }
  func.func @transform_7(%arg0: i32) -> (i32, i32) {
    %c0_i32 = arith.constant 0 : i32
    %c0_i32_0 = arith.constant 0 : i32
    return %c0_i32, %arg0 : i32, i32
  }
  func.func @transform_8(%arg0: i32) -> (i32, i32) {
    %c0_i32 = arith.constant 0 : i32
    %c0_i32_0 = arith.constant 0 : i32
    return %c0_i32, %arg0 : i32, i32
  }
  func.func @transform_9(%arg0: i32) -> (i32, i32, i32) {
    %c0_i32 = arith.constant 0 : i32
    %c0_i32_0 = arith.constant 0 : i32
    %c0_i32_1 = arith.constant 0 : i32
    return %c0_i32, %c0_i32_0, %arg0 : i32, i32, i32
  }
}

</mosaic_0001>

<bundles_post_ra>
// kernel: tpu_custom_call.1
= control target key start
LH: loop header
LB: loop body
LE: loop exit
PB: predicated region body
PF: predicated region fallthrough
CT: control target
= control target key end

     0   :  { %s2018_s0 = inlined_call_operand.hbm [shape: f32[3,2,512], index: 0, kind: input, shape index: {}]   ;;  %s2019_s1 = inlined_call_operand.hbm [shape: f32[3,2,512], index: 1, kind: input, shape index: {}]   ;;  %s2020_s2 = inlined_call_operand.hbm [shape: f32[3,2,512], index: 2, kind: input, shape index: {}]   ;;  %s2021_s3 = inlined_call_operand.hbm [shape: f32[3,2,512], index: 3, kind: input, shape index: {}]   ;;  %s2022_s4 = inlined_call_operand.hbm [shape: f32[3,2,512], index: 4, kind: input, shape index: {}]   ;;  %s2023_s5 = inlined_call_operand.hbm [shape: f32[3,2,512], index: 5, kind: input, shape index: {}]   ;;  %s2024_s6 = inlined_call_operand.vmem [shape: f32[2,512], index: 6, kind: input, shape index: {}]   ;;  %s2025_s7 = inlined_call_operand.hbm [shape: f32[2,512], index: 7, kind: input, shape index: {}]   ;;  %s2026_s8 = inlined_call_operand.hbm [shape: f32[2,512], index: 8, kind: input, shape index: {}]   ;;  %s2027_s9 = inlined_call_operand.vmem [shape: f32[2,3,512], index: 9, kind: output, shape index: {}]  }
   0x1   :  { %2036 = sst [smem:[#allocation25_spill]] %s2018_s0 }
   0x2   :  { %2037 = sst [smem:[#allocation26_spill]] %s2019_s1 }
   0x3   :  { %2038 = sst [smem:[#allocation27_spill]] %s2020_s2 }
   0x4   :  { %2039 = sst [smem:[#allocation28_spill]] %s2021_s3 }
   0x5   :  { %2040 = sst [smem:[#allocation29_spill]] %s2022_s4 }
   0x6   :  { %2041 = sst [smem:[#allocation30_spill]] %s2027_s9 }
   0x7   :  { %14 = vsyncpa [#allocation3], 0 }
   0x8   :  { %16 = vsyncpa [#allocation3 + $0x1], 0 }
   0x9   :  { %17 = vsyncpa [#allocation5], 0 }
   0xa   :  { %19 = vsyncpa [#allocation5 + $0x1], 0 }
   0xb   :  { %20 = vsyncpa [#allocation8], 0 }
   0xc   :  { %22 = vsyncpa [#allocation8 + $0x1], 0 }
   0xd   :  { %23 = vsyncpa [#allocation11], 0 }
   0xe   :  { %25 = vsyncpa [#allocation11 + $0x1], 0 }
   0xf   :  { %26 = vsyncpa [#allocation14], 0 }
  0x10   :  { %28 = vsyncpa [#allocation14 + $0x1], 0  ;;  %s1594_s30 = smov 0   ;;  %s1596_s10 = smov 0  }
  0x11   :  { %s1598_s11 = smov 0   ;;  %s1600_s12 = smov 0  }
  0x12 LB: > { %2042 = sst [smem:[#allocation21_spill]] %s1526_s11  ;;  %s1613_s13 = sadd.s32 4294967295, %s1530_s12   ;;  %s1530_s12 = sphi %s1600_s12, %s2070_s12   ;;  %s1526_s11 = sphi %s1598_s11, %s2075_s11   ;;  %s1522_s10 = sphi %s1596_s10, %s2074_s10   ;;  %s1518_s30 = sphi %s1594_s30, %s2073_s30  }
  0x13   : > { %s1616_s14 = sadd.s32 1, %s1530_s12   ;;  %s41_s16 = sadd.s32 1, %s1526_s11 }
  0x14   : > { %2043 = sst [smem:[#allocation22_spill]] %s1616_s14  ;;  %s38_s15 = ssub.s32 %s1530_s12, %s1616_s14 }
  0x15   : > { %p39_p0 = scmp.eq.s32.totalorder %s38_s15, 0  ;;  %p48_p1 = scmp.ne.s32.totalorder %s1526_s11, %s1522_s10 }
  0x16   : > { %p49_p2 = scmp.eq.s32.totalorder %s1530_s12, 0  ;;  %p54_p3 = scmp.ne.s32.totalorder %s1522_s10, %s1518_s30 }
  0x17   : > { %s1626_s17 = scalar_select %p39_p0, %s1526_s11, %s41_s16  }
  0x18   : > { %p50_p4 = por %p49_p2, %p48_p1  ;;  %p55_p5 = scmp.eq.s32.totalorder %s1613_s13, 0 }
  0x19   : > { %2044 = sst [smem:[#allocation23_spill]] %s1626_s17  ;;  %p286_p6 = scmp.eq.s32.totalorder %s1613_s13, 1 }
  0x1a   : > { %p1630_p7 = por %p55_p5, %p54_p3  ;;  %p1207_p8 = scmp.lt.s32.totalorder %s1530_s12, 2 }
  0x1b   : > { %p1635_p9 = por %p286_p6, %p48_p1  ;;  %s1640_s20 = sand.u32 1, %s1526_s11  }
  0x1c   : > { %s2045_s18 = scalar_select %p1630_p7, 1, 0 }
  0x1d   : > { %s2046_s19 = scalar_select %p1635_p9, 1, 0 }
  0x1e   : > { %s1643_s21 = smul.u32 12, %s1640_s20  ;;  %s1646_s22 = sshll.u32 %s1530_s12, 6 }
  0x1f   : > { %2047 = sst [smem:[#allocation24_spill]] %s2046_s19  ;;  %p1648_p10 = pnand %p1207_p8, %p50_p4 }
  0x20   : > { %s1653_s24 = sand.u32 1, %s1530_s12   ;;  %s2049_s1 = sld [smem:[#allocation26_spill]] }
  0x21   : > { %s337_s28 = scalar_lea.vmem [#allocation4], %s1643_s21  ;;  %p1670_p13 = pneg %p1648_p10 }
  0x22   : > { %s344_s29 = sshll.u32 %s337_s28, 4  ;;  %s1662_s29 = int_to_ptr.vmem [resolvable:$true] %s344_s29 }
  0x26   : > { %s1659_s27 = scalar_lea.hbm %s2049_s1, %s1646_s22  ;;  %s1261_s17 = scalar_lea.hbm %s2049_s1, 384 }
  0x27   : > { %s1256_s15 = scalar_lea.hbm %s1659_s27, 192  ;;  %p1262_p2 = scmp.lt.s32.totalorder %s1659_s27, %s2049_s1 }
  0x28   : > { %p1257_p12 = scmp.ne.s32.totalorder %s1659_s27, %s1256_s15  ;;  %p1263_p3 = scmp.lt.s32.totalorder %s1261_s17, %s1256_s15 }
  0x2a   : > { %p1259_p0 = pnand %p1670_p13, %p1257_p12  ;;  %p1264_p4 = por %p1263_p3, %p1262_p2 }
  0x2c   : > { %p1260_p1 = pneg %p1259_p0 }
  0x2e   : > { %p1265_p5 = pnand %p1264_p4, %p1260_p1 }
  0x30   : > { %1268 = shalt.err (!%p1265_p5)
}
  0x31   : > { %s1269_s30 = scalar_lea.vmem %s1662_s29, 192  ;;  %s1532_s14 = smov [#allocation4]  }
  0x32   : > { %p1270_p6 = scmp.ne.s32.totalorder %s1662_s29, %s1269_s30  ;;  %s1274_s25 = sshll.u32 %s1532_s14, 4  ;;  %s1275_s25 = int_to_ptr.vmem [resolvable:$false] %s1274_s25 }
  0x33   : > { %s1276_s26 = scalar_lea.vmem %s1275_s25, 384  ;;  %p1277_p0 = scmp.lt.s32.totalorder %s1662_s29, %s1275_s25 }
  0x34   : > { %p1272_p8 = pnand %p1270_p6, %p1670_p13  ;;  %p1278_p11 = scmp.lt.s32.totalorder %s1276_s26, %s1269_s30 }
  0x36   : > { %p1273_p12 = pneg %p1272_p8  ;;  %p1279_p9 = por %p1278_p11, %p1277_p0 }
  0x38   : > { %p1280_p7 = pnand %p1279_p9, %p1273_p12 }
  0x3a   : > { %1283 = shalt.err (!%p1280_p7)
}
  0x3b   : > { %s2034_s11 = smov 128   ;;  %s1534_s17 = smov 64  }
  0x3c   : > { %s1535_s14 = smov 4   ;;  %s2051_s30 = scalar_lea.sflag [#allocation5], %s1653_s24 }
  0x3d   : > { %1188 = dma.hbm_to_vmem [thread:$0]  (!%p1648_p10), %s1659_s27, 192, %s1662_s29, %s2051_s30, %s2034_s11, %s1534_s17, %s1535_s14  }
  0x3e   : > { %p483_p7 = scmp.lt.s32.totalorder %s1530_s12, 3  ;;  %s2052_s3 = sld [smem:[#allocation28_spill]] }
  0x3f   : > { %p2053_p9 = scmp.ge.s32.totalorder %s1530_s12, 1  ;;  %s379_s1 = scalar_lea.vmem [#allocation7], %s1643_s21 }
  0x40   : > { %s386_s9 = sshll.u32 %s379_s1, 4  ;;  %s1711_s9 = int_to_ptr.vmem [resolvable:$true] %s386_s9 }
  0x41   : > { %p1706_p11 = pnand %p2053_p9, %p483_p7 }
  0x43   : > { %s2054_s26 = scalar_select %p1706_p11, 1, 0 }
  0x44   : > { %s1702_s25 = scalar_lea.hbm %s2052_s3, %s1646_s22  ;;  %s1289_s12 = scalar_lea.hbm %s2052_s3, 384 }
  0x45   : > { %s1284_s27 = scalar_lea.hbm %s1702_s25, 192  ;;  %p1290_p4 = scmp.lt.s32.totalorder %s1702_s25, %s2052_s3 }
  0x46   : > { %p1285_p1 = scmp.ne.s32.totalorder %s1702_s25, %s1284_s27  ;;  %p1291_p5 = scmp.lt.s32.totalorder %s1289_s12, %s1284_s27 }
  0x48   : > { %p1287_p2 = pnand %p1285_p1, %p1670_p13  ;;  %p1292_p6 = por %p1291_p5, %p1290_p4 }
  0x4a   : > { %p1288_p3 = pneg %p1287_p2 }
  0x4c   : > { %p1293_p8 = pnand %p1292_p6, %p1288_p3 }
  0x4e   : > { %1296 = shalt.err (!%p1293_p8)
}
  0x4f   : > { %s1297_s1 = scalar_lea.vmem %s1711_s9, 192  ;;  %s1536_s19 = smov [#allocation7]  }
  0x50   : > { %p1298_p12 = scmp.ne.s32.totalorder %s1711_s9, %s1297_s1  ;;  %s1302_s29 = sshll.u32 %s1536_s19, 4  ;;  %s1303_s29 = int_to_ptr.vmem [resolvable:$false] %s1302_s29 }
  0x51   : > { %s1304_s30 = scalar_lea.vmem %s1303_s29, 384  ;;  %p1305_p9 = scmp.lt.s32.totalorder %s1711_s9, %s1303_s29 }
  0x52   : > { %p1300_p0 = pnand %p1298_p12, %p1670_p13  ;;  %p1306_p1 = scmp.lt.s32.totalorder %s1304_s30, %s1297_s1 }
  0x54   : > { %p1301_p7 = pneg %p1300_p0  ;;  %p1307_p2 = por %p1306_p1, %p1305_p9 }
  0x56   : > { %p1308_p11 = pnand %p1307_p2, %p1301_p7 }
  0x58   : > { %1311 = shalt.err (!%p1308_p11)
}
  0x59   : > { %s2055_s27 = scalar_lea.sflag [#allocation8], %s1653_s24  ;;  %s1743_s15 = scalar_lea.hbm %s2023_s5, %s1646_s22 }
  0x5a   : > { %1194 = dma.hbm_to_vmem [thread:$0]  (!%p1648_p10), %s1702_s25, 192, %s1711_s9, %s2055_s27, %s2034_s11, %s1534_s17, %s1535_s14  }
  0x5b   : > { %s421_s28 = scalar_lea.vmem [#allocation10], %s1643_s21  ;;  %s2033_s29 = scalar_lea.sflag [#allocation11], %s1653_s24 }
  0x5c   : > { %s428_s1 = sshll.u32 %s421_s28, 4  ;;  %s1312_s30 = scalar_lea.hbm %s1743_s15, 192  ;;  %s1746_s1 = int_to_ptr.vmem [resolvable:$true] %s428_s1 }
  0x5d   : > { %p1313_p11 = scmp.ne.s32.totalorder %s1743_s15, %s1312_s30  ;;  %s1317_s25 = scalar_lea.hbm %s2023_s5, 384 }
  0x5e   : > { %p1318_p5 = scmp.lt.s32.totalorder %s1743_s15, %s2023_s5  ;;  %p1319_p6 = scmp.lt.s32.totalorder %s1317_s25, %s1312_s30 }
  0x5f   : > { %p1315_p3 = pnand %p1313_p11, %p1670_p13 }
  0x60   : > { %p1320_p8 = por %p1319_p6, %p1318_p5 }
  0x61   : > { %p1316_p4 = pneg %p1315_p3 }
  0x63   : > { %p1321_p12 = pnand %p1320_p8, %p1316_p4 }
  0x65   : > { %1324 = shalt.err (!%p1321_p12)
}
  0x66   : > { %s1325_s12 = scalar_lea.vmem %s1746_s1, 192  ;;  %s1537_s28 = smov [#allocation10]  }
  0x67   : > { %p1326_p0 = scmp.ne.s32.totalorder %s1746_s1, %s1325_s12  ;;  %s1330_s3 = sshll.u32 %s1537_s28, 4  ;;  %s1331_s3 = int_to_ptr.vmem [resolvable:$false] %s1330_s3 }
  0x68   : > { %s1332_s9 = scalar_lea.vmem %s1331_s3, 384  ;;  %p1333_p1 = scmp.lt.s32.totalorder %s1746_s1, %s1331_s3 }
  0x69   : > { %p1328_p7 = pnand %p1326_p0, %p1670_p13  ;;  %p1334_p2 = scmp.lt.s32.totalorder %s1332_s9, %s1325_s12 }
  0x6b   : > { %p1329_p9 = pneg %p1328_p7  ;;  %p1335_p11 = por %p1334_p2, %p1333_p1 }
  0x6d   : > { %p1336_p3 = pnand %p1335_p11, %p1329_p9 }
  0x6f   : > { %1339 = shalt.err (!%p1336_p3)
}
  0x70   : > { %1200 = dma.hbm_to_vmem [thread:$0]  (!%p1648_p10), %s1743_s15, 192, %s1746_s1, %s2033_s29, %s2034_s11, %s1534_s17, %s1535_s14  }
  0x71   : > { %s2056_s0 = sld [smem:[#allocation25_spill]]  ;;  %s316_s19 = scalar_lea.vmem [#allocation2], %s1643_s21 }
  0x72   : > { %s323_s12 = sshll.u32 %s316_s19, 4  ;;  %s313_s28 = scalar_lea.sflag [#allocation3], %s1640_s20  ;;  %s1781_s12 = int_to_ptr.vmem [resolvable:$true] %s323_s12 }
  0x77   : > { %s1778_s27 = scalar_lea.hbm %s2056_s0, %s1646_s22  ;;  %s1345_s1 = scalar_lea.hbm %s2056_s0, 384 }
  0x78   : > { %s1340_s3 = scalar_lea.hbm %s1778_s27, 192  ;;  %p1346_p8 = scmp.lt.s32.totalorder %s1778_s27, %s2056_s0 }
  0x79   : > { %p1341_p4 = scmp.ne.s32.totalorder %s1778_s27, %s1340_s3  ;;  %p1347_p12 = scmp.lt.s32.totalorder %s1345_s1, %s1340_s3 }
  0x7b   : > { %p1343_p5 = pnand %p1341_p4, %p1670_p13  ;;  %p1348_p0 = por %p1347_p12, %p1346_p8 }
  0x7d   : > { %p1344_p6 = pneg %p1343_p5 }
  0x7f   : > { %p1349_p7 = pnand %p1348_p0, %p1344_p6 }
  0x81   : > { %1352 = shalt.err (!%p1349_p7)
}
  0x82   : > { %s1353_s19 = scalar_lea.vmem %s1781_s12, 192  ;;  %s1538_s29 = smov [#allocation2]  }
  0x83   : > { %p1354_p9 = scmp.ne.s32.totalorder %s1781_s12, %s1353_s19  ;;  %s1358_s9 = sshll.u32 %s1538_s29, 4  ;;  %s1359_s9 = int_to_ptr.vmem [resolvable:$false] %s1358_s9 }
  0x84   : > { %s1360_s15 = scalar_lea.vmem %s1359_s9, 384  ;;  %p1361_p11 = scmp.lt.s32.totalorder %s1781_s12, %s1359_s9 }
  0x85   : > { %p1356_p1 = pnand %p1354_p9, %p1670_p13  ;;  %p1362_p3 = scmp.lt.s32.totalorder %s1360_s15, %s1353_s19 }
  0x87   : > { %p1357_p2 = pneg %p1356_p1  ;;  %p1363_p4 = por %p1362_p3, %p1361_p11 }
  0x89   : > { %p1364_p5 = pnand %p1363_p4, %p1357_p2 }
  0x8b   : > { %1367 = shalt.err (!%p1364_p5)
}
  0x8c   : > { %1185 = dma.hbm_to_vmem [thread:$0]  (!%p1648_p10), %s1778_s27, 192, %s1781_s12, %s313_s28, %s2034_s11, %s1534_s17, %s1535_s14  }
  0x8d   : > { %s2057_s2 = sld [smem:[#allocation27_spill]]  ;;  %s358_s30 = scalar_lea.vmem [#allocation6], %s1643_s21 }
  0x8e   : > { %s365_s25 = sshll.u32 %s358_s30, 4  ;;  %s366_s25 = int_to_ptr.vmem [resolvable:$true] %s365_s25 }
  0x93   : > { %s1811_s1 = scalar_lea.hbm %s2057_s2, %s1646_s22  ;;  %s1373_s27 = scalar_lea.hbm %s2057_s2, 384 }
  0x94   : > { %s1368_s19 = scalar_lea.hbm %s1811_s1, 192  ;;  %p1374_p0 = scmp.lt.s32.totalorder %s1811_s1, %s2057_s2 }
  0x95   : > { %p1369_p6 = scmp.ne.s32.totalorder %s1811_s1, %s1368_s19  ;;  %p1375_p7 = scmp.lt.s32.totalorder %s1373_s27, %s1368_s19 }
  0x97   : > { %p1371_p8 = pnand %p1369_p6, %p1670_p13  ;;  %p1376_p9 = por %p1375_p7, %p1374_p0 }
  0x99   : > { %p1372_p12 = pneg %p1371_p8 }
  0x9b   : > { %p1377_p1 = pnand %p1376_p9, %p1372_p12 }
  0x9d   : > { %1380 = shalt.err (!%p1377_p1)
}
  0x9e   : > { %s1381_s3 = scalar_lea.vmem %s366_s25, 192  ;;  %s1539_s29 = smov [#allocation6]  }
  0x9f   : > { %p1382_p2 = scmp.ne.s32.totalorder %s366_s25, %s1381_s3  ;;  %s1386_s30 = sshll.u32 %s1539_s29, 4  ;;  %s1387_s30 = int_to_ptr.vmem [resolvable:$false] %s1386_s30 }
  0xa0   : > { %s1388_s11 = scalar_lea.vmem %s1387_s30, 384  ;;  %p1389_p4 = scmp.lt.s32.totalorder %s366_s25, %s1387_s30 }
  0xa1   : > { %p1384_p11 = pnand %p1382_p2, %p1670_p13  ;;  %p1390_p5 = scmp.lt.s32.totalorder %s1388_s11, %s1381_s3 }
  0xa3   : > { %p1385_p3 = pneg %p1384_p11  ;;  %p1391_p6 = por %p1390_p5, %p1389_p4 }
  0xa5   : > { %p1392_p8 = pnand %p1391_p6, %p1385_p3 }
  0xa7   : > { %1395 = shalt.err (!%p1392_p8)
}
  0xa8   : > { %s2058_s19 = smov 128   ;;  %s2059_s9 = scalar_lea.sflag [#allocation5], %s1653_s24 }
  0xa9   : > { %1191 = dma.hbm_to_vmem [thread:$0]  (!%p1648_p10), %s1811_s1, 192, %s366_s25, %s2059_s9, %s2058_s19, %s1534_s17, %s1535_s14  }
  0xaa   : > { %s2060_s4 = sld [smem:[#allocation29_spill]]  ;;  %s400_s12 = scalar_lea.vmem [#allocation9], %s1643_s21 }
  0xab   : > { %s407_s28 = sshll.u32 %s400_s12, 4  ;;  %s1116_s3 = sshll.u32 %s1640_s20, 2  ;;  %s1842_s28 = int_to_ptr.vmem [resolvable:$true] %s407_s28 }
  0xb0   : > { %s1839_s11 = scalar_lea.hbm %s2060_s4, %s1646_s22  ;;  %s1401_s25 = scalar_lea.hbm %s2060_s4, 384 }
  0xb1   : > { %s1396_s29 = scalar_lea.hbm %s1839_s11, 192  ;;  %p1402_p9 = scmp.lt.s32.totalorder %s1839_s11, %s2060_s4 }
  0xb2   : > { %p1397_p12 = scmp.ne.s32.totalorder %s1839_s11, %s1396_s29  ;;  %p1403_p1 = scmp.lt.s32.totalorder %s1401_s25, %s1396_s29 }
  0xb4   : > { %p1399_p0 = pnand %p1397_p12, %p1670_p13  ;;  %p1404_p2 = por %p1403_p1, %p1402_p9 }
  0xb6   : > { %p1400_p7 = pneg %p1399_p0 }
  0xb8   : > { %p1405_p11 = pnand %p1404_p2, %p1400_p7 }
  0xba   : > { %1408 = shalt.err (!%p1405_p11)
}
  0xbb   : > { %s1409_s21 = scalar_lea.vmem %s1842_s28, 192  ;;  %s1540_s27 = smov [#allocation9]  }
  0xbc   : > { %p1410_p3 = scmp.ne.s32.totalorder %s1842_s28, %s1409_s21  ;;  %s1414_s12 = sshll.u32 %s1540_s27, 4  ;;  %s1415_s12 = int_to_ptr.vmem [resolvable:$false] %s1414_s12 }
  0xbd   : > { %s1416_s30 = scalar_lea.vmem %s1415_s12, 384  ;;  %p1417_p6 = scmp.lt.s32.totalorder %s1842_s28, %s1415_s12 }
  0xbe   : > { %p1412_p4 = pnand %p1410_p3, %p1670_p13  ;;  %p1418_p8 = scmp.lt.s32.totalorder %s1416_s30, %s1409_s21 }
  0xc0   : > { %p1413_p5 = pneg %p1412_p4  ;;  %p1419_p12 = por %p1418_p8, %p1417_p6 }
  0xc2   : > { %p1420_p0 = pnand %p1419_p12, %p1413_p5 }
  0xc4   : > { %1423 = shalt.err (!%p1420_p0)
}
  0xc5   : > { %s2061_s29 = scalar_lea.sflag [#allocation8], %s1653_s24  ;;  %s457_s9 = scalar_lea.hbm %s2025_s7, %s1646_s22 }
  0xc6   : > { %1197 = dma.hbm_to_vmem [thread:$0]  (!%p1648_p10), %s1839_s11, 192, %s1842_s28, %s2061_s29, %s2058_s19, %s1534_s17, %s1535_s14  }
  0xc7   : > { %s451_s15 = scalar_lea.vmem [#allocation12], %s1116_s3  ;;  %s1424_s27 = scalar_lea.hbm %s457_s9, 64 }
  0xc8   : > { %s459_s21 = sshll.u32 %s451_s15, 4  ;;  %p1425_p7 = scmp.ne.s32.totalorder %s457_s9, %s1424_s27  ;;  %s460_s21 = int_to_ptr.vmem [resolvable:$true] %s459_s21 }
  0xc9   : > { %s1429_s0 = scalar_lea.hbm %s2025_s7, 128  ;;  %p1430_p2 = scmp.lt.s32.totalorder %s457_s9, %s2025_s7 }
  0xca   : > { %p1427_p9 = pnand %p1425_p7, %p1670_p13  ;;  %p1431_p11 = scmp.lt.s32.totalorder %s1429_s0, %s1424_s27 }
  0xcc   : > { %p1428_p1 = pneg %p1427_p9  ;;  %p1432_p3 = por %p1431_p11, %p1430_p2 }
  0xce   : > { %p1433_p4 = pnand %p1432_p3, %p1428_p1 }
  0xd0   : > { %1436 = shalt.err (!%p1433_p4)
}
  0xd1   : > { %s1437_s17 = scalar_lea.vmem %s460_s21, 64  ;;  %s1541_s14 = smov [#allocation12]  }
  0xd2   : > { %p1438_p5 = scmp.ne.s32.totalorder %s460_s21, %s1437_s17  ;;  %s1442_s19 = sshll.u32 %s1541_s14, 4  ;;  %s1443_s19 = int_to_ptr.vmem [resolvable:$false] %s1442_s19 }
  0xd3   : > { %s1444_s11 = scalar_lea.vmem %s1443_s19, 128  ;;  %p1445_p12 = scmp.lt.s32.totalorder %s460_s21, %s1443_s19 }
  0xd4   : > { %p1440_p6 = pnand %p1438_p5, %p1670_p13  ;;  %p1446_p0 = scmp.lt.s32.totalorder %s1444_s11, %s1437_s17 }
  0xd6   : > { %p1441_p8 = pneg %p1440_p6  ;;  %p1447_p7 = por %p1446_p0, %p1445_p12 }
  0xd8   : > { %p1448_p9 = pnand %p1447_p7, %p1441_p8 }
  0xda   : > { %1451 = shalt.err (!%p1448_p9)
}
  0xdb   : > { %s2062_s0 = scalar_lea.sflag [#allocation11], %s1653_s24  ;;  %s1894_s28 = scalar_lea.hbm %s2026_s8, %s1646_s22 }
  0xdc   : > { %1203 = dma.hbm_to_vmem [thread:$0]  (!%p1648_p10), %s457_s9, 64, %s460_s21, %s2062_s0  }
  0xdd   : > { %s470_s29 = scalar_lea.vmem [#allocation13], %s1116_s3  ;;  %s467_s25 = scalar_lea.sflag [#allocation14], %s1640_s20 }
  0xde   : > { %s478_s1 = sshll.u32 %s470_s29, 4  ;;  %s1452_s15 = scalar_lea.hbm %s1894_s28, 64  ;;  %s479_s1 = int_to_ptr.vmem [resolvable:$true] %s478_s1 }
  0xdf   : > { %p1453_p1 = scmp.ne.s32.totalorder %s1894_s28, %s1452_s15  ;;  %s1457_s21 = scalar_lea.hbm %s2026_s8, 128 }
  0xe0   : > { %p1458_p3 = scmp.lt.s32.totalorder %s1894_s28, %s2026_s8  ;;  %p1459_p4 = scmp.lt.s32.totalorder %s1457_s21, %s1452_s15 }
  0xe1   : > { %p1455_p2 = pnand %p1453_p1, %p1670_p13 }
  0xe2   : > { %p1460_p5 = por %p1459_p4, %p1458_p3 }
  0xe3   : > { %p1456_p11 = pneg %p1455_p2 }
  0xe5   : > { %p1461_p6 = pnand %p1460_p5, %p1456_p11 }
  0xe7   : > { %1464 = shalt.err (!%p1461_p6)
}
  0xe8   : > { %s1465_s3 = scalar_lea.vmem %s479_s1, 64  ;;  %s1542_s20 = smov [#allocation13]  }
  0xe9   : > { %p1466_p8 = scmp.ne.s32.totalorder %s479_s1, %s1465_s3  ;;  %s1470_s12 = sshll.u32 %s1542_s20, 4  ;;  %s1471_s12 = int_to_ptr.vmem [resolvable:$false] %s1470_s12 }
  0xea   : > { %s1472_s30 = scalar_lea.vmem %s1471_s12, 128  ;;  %p1473_p7 = scmp.lt.s32.totalorder %s479_s1, %s1471_s12 }
  0xeb   : > { %p1468_p12 = pnand %p1466_p8, %p1670_p13  ;;  %p1474_p9 = scmp.lt.s32.totalorder %s1472_s30, %s1465_s3 }
  0xed   : > { %p1469_p0 = pneg %p1468_p12  ;;  %p1475_p1 = por %p1474_p9, %p1473_p7 }
  0xef   : > { %p1476_p2 = pnand %p1475_p1, %p1469_p0 }
  0xf1   : > { %1479 = shalt.err (!%p1476_p2)
}
  0xf2   : > { %1206 = dma.hbm_to_vmem [thread:$0]  (!%p1648_p10), %s1894_s28, 64, %s479_s1, %s467_s25  }
  0xf3   : > { %p2063_p11 = scmp.ne.s32.totalorder %s2054_s26, 0 }
  0xf4   : > { %s1918_s16 = sand.u32 (!%p2063_p11), 1, %s1522_s10   ;;  %p2064_p13 = scmp.ne.s32.totalorder (!%p2063_p11), %s2045_s18, 0 }
  0xf5   : > { %487 = sbr.rel (%p2063_p11) target bundleno = 320 (0x140), region = 56  ;;  %s490_s14 = scalar_lea.sflag (!%p2063_p11), [#allocation3], %s1918_s16 }
  0xf6   : > { %s1165_s17 = smul.u32 (!%p2063_p11), 12, %s1918_s16 }
  0xf8   : > { %s493_s19 = scalar_lea.vmem (!%p2063_p11), [#allocation2], %s1165_s17 }
  0xfa   : > { %1497 = dma.done.wait (%p2064_p13), %s490_s14, 192  }
  0xfb   : > { %1499 = vsyncadd (%p2064_p13), %s490_s14, 4294967104  ;;  %s498_s23 = sand.u32 1, %s1613_s13   ;;  %s502_s26 = scalar_lea.vmem [#allocation4], %s1165_s17 }
  0xfc   : > { %s499_s11 = scalar_lea.sflag [#allocation5], %s498_s23 }
  0xfd   : > { %1501 = dma.done.wait (%p2064_p13), %s499_s11, 384  }
  0xfe   : > { %1503 = vsyncadd (%p2064_p13), %s499_s11, 4294966912  ;;  %s1931_s0 = scalar_lea.vmem [#allocation6], %s1165_s17  ;;  %s517_s2 = scalar_lea.sflag [#allocation8], %s498_s23 }
  0xff   : > { %s520_s4 = scalar_lea.vmem [#allocation7], %s1165_s17 }
 0x100   : > { %1505 = dma.done.wait (%p2064_p13), %s517_s2, 384  }
 0x101   : > { %1507 = vsyncadd (%p2064_p13), %s517_s2, 4294966912  ;;  %s529_s28 = scalar_lea.vmem [#allocation9], %s1165_s17  ;;  %s535_s29 = scalar_lea.sflag [#allocation11], %s498_s23 }
 0x102   : > { %s1937_s1 = scalar_lea.vmem [#allocation10], %s1165_s17 }
 0x103   : > { %1509 = dma.done.wait (%p2064_p13), %s535_s29, 256  }
 0x104   : > { %1511 = vsyncadd (%p2064_p13), %s535_s29, 4294967040  ;;  %s1123_s25 = sshll.u32 %s1918_s16, 2  ;;  %s553_s24 = scalar_lea.sflag [#allocation14], %s1918_s16 }
 0x105   : > { %s1944_s15 = scalar_lea.vmem [#allocation12], %s1123_s25  ;;  %s1947_s9 = scalar_lea.vmem [#allocation13], %s1123_s25 }
 0x106   : > { %1513 = dma.done.wait (%p2064_p13), %s553_s24, 64  }
 0x107   : > { %1515 = vsyncadd (%p2064_p13), %s553_s24, 4294967232  ;;  %v645_v0 = vld [vmem:[%s493_s19] sm:$0xf]  ;;  %v646_v1 = vld [vmem:[%s502_s26] sm:$0xf]  ;;  %s1126_s18 = sshll.u32 %s1613_s13, 1 }
 0x108   : > { %v1128_v2 = vld [vmem:[%s493_s19 + $0x4] sm:$0xf]  ;;  %v647_v3 = vsub.f32 %v645_v0, %v646_v1  ;;  %v1129_v4 = vld [vmem:[%s502_s26 + $0x4] sm:$0xf]  ;;  %v1130_v5 = vld [vmem:[%s493_s19 + $0x8] sm:$0xf] }
 0x109   : > { %v1131_v6 = vld [vmem:[%s502_s26 + $0x8] sm:$0xf]  ;;  %v652_v7 = vsub.f32 %v1128_v2, %v1129_v4  ;;  %v705_v9 = vld [vmem:[%s520_s4] sm:$0xf]  ;;  %v1134_v11 = vld [vmem:[%s520_s4 + $0x4] sm:$0xf] }
 0x10a   : > { %v657_v8 = vsub.f32 %v1130_v5, %v1131_v6  ;;  %v706_v10 = vld [vmem:[%s529_s28] sm:$0xf]  ;;  %v658_v12 = vmul.f32 %v647_v3, %v647_v3  ;;  %v1135_v14 = vld [vmem:[%s529_s28 + $0x4] sm:$0xf]  ;;  %v1136_v15 = vld [vmem:[%s520_s4 + $0x8] sm:$0xf] }
 0x10b   : > { %v707_v13 = vsub.f32 %v705_v9, %v706_v10  ;;  %v1137_v16 = vld [vmem:[%s529_s28 + $0x8] sm:$0xf]  ;;  %v659_v17 = vmul.f32 %v652_v7, %v652_v7  ;;  %v712_v19 = vsub.f32 %v1134_v11, %v1135_v14  ;;  %v670_v21 = vld [vmem:[%s1931_s0] sm:$0xf]  ;;  %v1132_v24 = vld [vmem:[%s1931_s0 + $0x4] sm:$0xf]  ;;  %v776_v7 = vlaneseq }
 0x10c   : > { %v661_v18 = vmul.f32 %v657_v8, %v657_v8  ;;  %v717_v20 = vsub.f32 %v1136_v15, %v1137_v16  ;;  %v671_v23 = vsub.f32 %v645_v0, %v670_v21  ;;  %v1133_v25 = vld [vmem:[%s1931_s0 + $0x8] sm:$0xf]  ;;  %v674_v30 = vsub.f32 %v1128_v2, %v1132_v24  ;;  %v1138_v31 = vld [vmem:[%s1937_s1 + $0x4] sm:$0xf]  ;;  %v1139_v32 = vld [vmem:[%s1937_s1 + $0x8] sm:$0xf] }
 0x10d   : > { %v718_v22 = vmul.f32 %v707_v13, %v707_v13  ;;  %v730_v26 = vld [vmem:[%s1937_s1] sm:$0xf]  ;;  %v660_v27 = vadd.f32 %v659_v17, %v658_v12  ;;  %v719_v28 = vmul.f32 %v712_v19, %v712_v19  ;;  %v677_v33 = vsub.f32 %v1130_v5, %v1133_v25  ;;  %p637_p10 = scmp.lt.s32.totalorder %s1126_s18, 3  ;;  %s1125_s20 = sshll.u32 %s1918_s16, 4 }
 0x10e   : > { %v721_v29 = vmul.f32 %v717_v20, %v717_v20  ;;  %v678_v34 = vmul.f32 %v671_v23, %v671_v23  ;;  %v731_v35 = vsub.f32 %v705_v9, %v730_v26  ;;  %v734_v36 = vsub.f32 %v1134_v11, %v1138_v31  ;;  %s629_s12 = scalar_lea.vmem [#allocation15], %s1125_s20  ;;  %s2067_s30 = sld [smem:[#allocation24_spill]] }
 0x10f   : > { %v662_v37 = vadd.f32 %v661_v18, %v660_v27  ;;  %v720_v38 = vadd.f32 %v719_v28, %v718_v22  ;;  %v679_v39 = vmul.f32 %v674_v30, %v674_v30  ;;  %v737_v40 = vsub.f32 %v1136_v15, %v1139_v32  ;;  %s2077_s18 = smov (!%p637_p10, %s1126_s18), 3  ;;  %v767_v28 = vld [vmem:[%s1947_s9] sm:$0xf] }
 0x110   : > { %v738_v41 = vmul.f32 %v731_v35, %v731_v35  ;;  %v739_v42 = vmul.f32 %v734_v36, %v734_v36  ;;  %v681_v43 = vmul.f32 %v677_v33, %v677_v33  ;;  %v690_v44 = vsub.f32 %v646_v1, %v670_v21  ;;  %s1127_s21 = sshll.u32 %s2077_s18, 1 }
 0x111   : > { %1244 = vrsqrt.f32 %v662_v37  ;;  %v722_v45 = vadd.f32 %v721_v29, %v720_v38  ;;  %v680_v46 = vadd.f32 %v679_v39, %v678_v34  ;;  %v741_v48 = vmul.f32 %v737_v40, %v737_v40  ;;  %s640_s3 = scalar_lea.vmem %s2024_s6, %s1127_s21 }
 0x112   : > { %v740_v47 = vadd.f32 %v739_v42, %v738_v41  ;;  %v691_v49 = vsub.f32 %v1129_v4, %v1132_v24  ;;  %v692_v50 = vsub.f32 %v1131_v6, %v1133_v25  ;;  %v750_v51 = vsub.f32 %v706_v10, %v730_v26  ;;  %v765_v13 = vld [vmem:[%s640_s3] sm:$0xf] }
 0x113   : > { %1246 = vrsqrt.f32 %v722_v45  ;;  %v682_v52 = vadd.f32 %v681_v43, %v680_v46  ;;  %v693_v54 = vmul.f32 %v690_v44, %v690_v44  ;;  %v751_v56 = vsub.f32 %v1135_v14, %v1138_v31  ;;  %v766_v14 = vld [vmem:[%s1944_s15] sm:$0xf] }
 0x114   : > { %v742_v53 = vadd.f32 %v741_v48, %v740_v47  ;;  %v694_v55 = vmul.f32 %v691_v49, %v691_v49  ;;  %v752_v57 = vsub.f32 %v1137_v16, %v1139_v32  ;;  %v696_v58 = vmul.f32 %v692_v50, %v692_v50  ;;  %p2068_p3 = scmp.ne.s32.totalorder %s2067_s30, 0 }
 0x115   : > { %1248 = vrsqrt.f32 %v682_v52  ;;  %v753_v59 = vmul.f32 %v750_v51, %v750_v51  ;;  %v754_v61 = vmul.f32 %v751_v56, %v751_v56  ;;  %vm665_vm0 = vcmp.eq.f32.partialorder %v662_v37, inf  ;;  %s1158_s16 = sshll.u32 (%p2068_p3), %s1613_s13, 3  ;;  %s2069_s19 = sld [smem:[#allocation30_spill]] (%p2068_p3) }
 0x116   : > { %1250 = vrsqrt.f32 %v742_v53  ;;  %v695_v60 = vadd.f32 %v694_v55, %v693_v54  ;;  %v756_v62 = vmul.f32 %v752_v57, %v752_v57  ;;  %v668_v4 = vand.u32 2147483648, %v662_v37 }
 0x117   : > { %v755_v0 = vadd.f32 %v754_v61, %v753_v59  ;;  %v1543_v5 = vmov 1966171168   ;;  %vm667_vm1 = vcmp.eq.f32.partialorder %v662_v37, 0.0  ;;  %vm725_vm2 = vcmp.eq.f32.partialorder %v722_v45, inf }
 0x118   : > { %v1960_v63 = vadd.f32 %v696_v58, %v695_v60  ;;  %v774_v6 = vunpack.c.l.s4 %v1543_v5  ;;  %v728_v10 = vand.u32 2147483648, %v722_v45  ;;  %vm727_vm3 = vcmp.eq.f32.partialorder %v722_v45, 0.0 }
 0x119   : > { %v1963_v2 = vadd.f32 %v756_v62, %v755_v0  ;;  %v777_v16 = vshrl.u32 %v776_v7, 7  ;;  %vm685_vm4 = vcmp.eq.f32.partialorder %v682_v52, inf  ;;  %vm687_vm5 = vcmp.eq.f32.partialorder %v682_v52, 0.0 }
 0x11a   : > { %1252 = vrsqrt.f32 %v1960_v63  ;;  %v775_v15 = vunpack.c.0.s8 %v774_v6  ;;  %v688_v19 = vand.u32 2147483648, %v682_v52  ;;  %vm745_vm6 = vcmp.eq.f32.partialorder %v742_v53, inf }
 0x11b   : > { %1254 = vrsqrt.f32 %v1963_v2  ;;  %v748_v23 = vand.u32 2147483648, %v742_v53  ;;  %v770_v25 = vmul.f32 %v766_v14, %v765_v13  ;;  %vm747_vm7 = vcmp.eq.f32.partialorder %v742_v53, 0.0  ;;  %s837_s23 = scalar_lea.vmem (%p2068_p3), %s2069_s19, %s1158_s16 }
 0x11c   : > { %v778_v30 = vsub.s32 %v775_v15, %v777_v16  ;;  %vm700_vm8 = vcmp.eq.f32.partialorder %v1960_v63, inf  ;;  %vm1974_vm9 = vcmp.lt.s32.totalorder %v776_v7, 256  ;;  %v703_v40 = vand.u32 2147483648, %v1960_v63 }
 0x11d   : > { %vm702_vm10 = vcmp.eq.f32.partialorder %v1960_v63, 0.0  ;;  %vm760_vm11 = vcmp.eq.f32.partialorder %v1963_v2, inf  ;;  %vm762_vm12 = vcmp.eq.f32.partialorder %v1963_v2, 0.0  ;;  %v811_v55 = vmul.f32 %v767_v28, %v766_v14 }
 0x11e   : > { %v1245_v1 = vpop.eup %1244 }
 0x11f   : > { %v664_v3 = vmul.f32 %v1245_v1, %v662_v37 }
 0x120   : > { %v1247_v8 = vpop.eup %1246 }
 0x121   : > { %v666_v9 = vsel %vm665_vm0, %v662_v37, %v664_v3  ;;  %v724_v11 = vmul.f32 %v1247_v8, %v722_v45  ;;  %v792_v37 = vmul.f32 %v767_v28, %v765_v13 }
 0x122   : > { %v669_v12 = vsel %vm667_vm1, %v668_v4, %v666_v9  ;;  %v1249_v17 = vpop.eup %1248 }
 0x123   : > { %v726_v18 = vsel %vm725_vm2, %v722_v45, %v724_v11  ;;  %v1251_v20 = vpop.eup %1250  ;;  %v684_v22 = vmul.f32 %v1249_v17, %v682_v52  ;;  %v763_v45 = vand.u32 2147483648, %v1963_v2 }
 0x124   : > { %v729_v21 = vsel %vm727_vm3, %v728_v10, %v726_v18  ;;  %v744_v26 = vmul.f32 %v1251_v20, %v742_v53 }
 0x125   : > { %v768_v24 = vsub.f32 %v669_v12, %v729_v21  ;;  %v686_v27 = vsel %vm685_vm4, %v682_v52, %v684_v22 }
 0x126   : > { %v689_v31 = vsel %vm687_vm5, %v688_v19, %v686_v27  ;;  %v746_v32 = vsel %vm745_vm6, %v742_v53, %v744_v26 }
 0x127   : > { %v769_v29 = vand.u32 2147483647, %v768_v24  ;;  %v749_v33 = vsel %vm747_vm7, %v748_v23, %v746_v32  ;;  %v1253_v34 = vpop.eup %1252 }
 0x128   : > { %v790_v36 = vsub.f32 %v689_v31, %v749_v33  ;;  %v699_v39 = vmul.f32 %v1253_v34, %v1960_v63  ;;  %v1255_v43 = vpop.eup %1254 }
 0x129   : > { %v771_v35 = vmul.f32 %v770_v25, %v769_v29  ;;  %v759_v48 = vmul.f32 %v1255_v43, %v1963_v2 }
 0x12a   : > { %v791_v42 = vand.u32 2147483647, %v790_v36  ;;  %v701_v44 = vsel %vm700_vm8, %v1960_v63, %v699_v39 }
 0x12b   : > { %v779_v41 = vrot.slane %v771_v35, %v778_v30  ;;  %v704_v49 = vsel %vm702_vm10, %v703_v40, %v701_v44  ;;  %v761_v51 = vsel %vm760_vm11, %v1963_v2, %v759_v48 }
 0x12c   : > { %v793_v47 = vmul.f32 %v792_v37, %v791_v42  ;;  %v764_v52 = vsel %vm762_vm12, %v763_v45, %v761_v51 }
 0x12d   : > { %787 = vst.msk [vmem:[%s629_s12] ss:$4 sm:$0x3] %vm1974_vm9, %v779_v41  ;;  %v780_v46 = vcombine.high %v779_v41, %v779_v41  ;;  %v809_v54 = vsub.f32 %v704_v49, %v764_v52 }
 0x12e   : > { %v801_v50 = vrot.slane %v793_v47, %v778_v30 }
 0x12f   : > { %1140 = vst.msk [vmem:[%s629_s12 + $0x8] ss:$4 sm:$0x3] %vm1974_vm9, %v780_v46  ;;  %v810_v56 = vand.u32 2147483647, %v809_v54 }
 0x130   : > { %1141 = vst.msk [vmem:[%s629_s12 + $0x1] ss:$4 sm:$0x3] %vm1974_vm9, %v801_v50  ;;  %v802_v53 = vcombine.high %v801_v50, %v801_v50 }
 0x131   : > { %v812_v57 = vmul.f32 %v811_v55, %v810_v56 }
 0x132   : > { %1142 = vst.msk [vmem:[%s629_s12 + $0x9] ss:$4 sm:$0x3] %vm1974_vm9, %v802_v53 }
 0x133   : > { %v820_v58 = vrot.slane %v812_v57, %v778_v30  ;;  %834 = sbr.rel (!%p2068_p3) target bundleno = 320 (0x140), region = 92 }
 0x135   : > { %1143 = vst.msk [vmem:[%s629_s12 + $0x2] ss:$4 sm:$0x3] %vm1974_vm9, %v820_v58  ;;  %v821_v59 = vcombine.high %v820_v58, %v820_v58 }
 0x137   : > { %1144 = vst.msk [vmem:[%s629_s12 + $0xa] ss:$4 sm:$0x3] %vm1974_vm9, %v821_v59 }
 0x13c   : > { %v868_v60 = vld [vmem:[%s629_s12] sm:$0xff] }
 0x13d   : > { %869 = vst [vmem:[%s837_s23] sm:$0xff] %v868_v60 }
 0x13e   : > { %v870_v61 = vld [vmem:[%s629_s12 + $0x8] sm:$0xff] }
 0x13f   : > { %871 = vst [vmem:[%s837_s23 + $0x10] sm:$0xff] %v870_v61 }
 0x140 PF: > { %s2070_s12 = sld [smem:[#allocation22_spill]]  ;;  %s2073_s30 = smov %s1522_s10 }
 0x141   : > { %s2071_s11 = sld [smem:[#allocation21_spill]] }
 0x142   : > { %s2072_s26 = sld [smem:[#allocation23_spill]] }
 0x146   : > { %p31_p4 = scmp.ge.s32.totalorder %s2070_s12, 4  }
 0x147   : > { %s2074_s10 = smov %s2071_s11 }
 0x148   : > { %s2075_s11 = smov %s2072_s26  ;;  %33 = sbr.rel (!%p31_p4) target bundleno = 18 (0x12), region = 239 }
 0x14d   :  { %887 = vsyncpa [#allocation3], 1 }
 0x14e   :  { %889 = vsyncpa [#allocation3 + $0x1], 1 }
 0x14f   :  { %890 = vsyncpa [#allocation5], 1 }
 0x150   :  { %892 = vsyncpa [#allocation5 + $0x1], 1 }
 0x151   :  { %893 = vsyncpa [#allocation8], 1 }
 0x152   :  { %895 = vsyncpa [#allocation8 + $0x1], 1 }
 0x153   :  { %896 = vsyncpa [#allocation11], 1 }
 0x154   :  { %898 = vsyncpa [#allocation11 + $0x1], 1 }
 0x155   :  { %899 = vsyncpa [#allocation14], 1 }
 0x156   :  { %901 = vsyncpa [#allocation14 + $0x1], 1 }

</bundles_post_ra>
